<compile_context>
chip_gen: v7x
topology: tpu7x:2x2x1
jax: 0.10.0
libtpu: 0.0.40
codegen_flags: <defaults>
</compile_context>

<pallas_src>
import jax
import jax.numpy as jnp
from jax.experimental import pallas as pl
from jax.experimental.pallas import tpu as pltpu


def _lstm_bidir_head_kernel(tok_ref,     # (T,)      int32 token ids   [SMEM]
                            embed_ref,   # (Vp, Dp)  padded embed tbl  [VMEM]
                            wih_ref,     # (Dp, 8H)  packed [W_ih_f^T | W_ih_b^T]
                            b_ref,       # (1, 8H)   packed [b_f | b_b]
                            whh_f_ref,   # (H, 4H)   forward W_hh^T (g-cols x2)
                            wfc_ref,     # (2H, O)   fc weight^T
                            bfc_ref,     # (1, O)
                            out_ref,     # (1, O)    log-probabilities
                            x_vmem,      # (T, Dp)   gathered embeddings scratch
                            gx_vmem):    # (T, 8H)   packed input-projection scratch
    T, _ = x_vmem.shape
    H = whh_f_ref.shape[0]
    H4 = whh_f_ref.shape[1]          # 4H

    # ---- fused embedding gather: dynamic sublane loads from the VMEM table --
    # (no DMAs: the whole padded table is VMEM-resident; each row is one vld)
    for t in range(T):
        x_vmem[pl.ds(t, 1), :] = embed_ref[pl.ds(tok_ref[t], 1), :]

    # ---- hoisted, packed input projection: (T,Dp)@(Dp,8H) + b ---------------
    # g-gate columns of wih / b already carry the x2 folding from pack_params.
    gx_vmem[...] = (jnp.dot(x_vmem[...], wih_ref[...],
                            preferred_element_type=jnp.float32)
                    + b_ref[...])                           # (T, 8H)

    # Hoisted lane constants for the single-EUP activation:
    #   tanh(x) = 2*sigmoid(2x) - 1, with the 2x already folded into weights,
    #   so activate(gates) = sigmoid(gates) * post_mul + post_off.
    lane = jax.lax.broadcasted_iota(jnp.int32, (1, H4), 1)
    g_lane = (lane >= 2 * H) & (lane < 3 * H)
    post_mul = jnp.where(g_lane, 2.0, 1.0).astype(jnp.float32)   # (1, 4H)
    post_off = jnp.where(g_lane, -1.0, 0.0).astype(jnp.float32)  # (1, 4H)

    def activate(gates):                                    # (1, 4H) -> (1, 4H)
        return jax.nn.sigmoid(gates) * post_mul + post_off  # one EUP push + FMA

    # NOTE: whh_f is loaded once and the T=8 loop is fully unrolled; explicit
    # weight-stationary MXU driving (pltpu.matmul_push_rhs / matmul_acc_lhs)
    # is a possible follow-up, kept as jnp.dot here for lowering robustness.
    whh_f = whh_f_ref[...]

    h = jnp.zeros((1, H), jnp.float32)
    c = jnp.zeros((1, H), jnp.float32)

    # ---- forward recurrence, fully unrolled (T static) ----------------------
    for t in range(T):
        gates = gx_vmem[pl.ds(t, 1), 0:H4] + jnp.dot(
            h, whh_f, preferred_element_type=jnp.float32)
        act = activate(gates)
        i_g = act[:, 0:H]
        f_g = act[:, H:2 * H]
        g_g = act[:, 2 * H:3 * H]
        o_g = act[:, 3 * H:4 * H]
        c = f_g * c + i_g * g_g
        h = o_g * jnp.tanh(c)

    # ---- backward direction --------------------------------------------------
    # lstm_out[-1]'s backward half is the backward LSTM's first step (x[T-1]
    # from the zero state); with h0 = c0 = 0 the recurrent matmul and the f*c
    # term vanish entirely.
    act_b = activate(gx_vmem[pl.ds(T - 1, 1), H4:2 * H4])
    c_b = act_b[:, 0:H] * act_b[:, 2 * H:3 * H]             # i * g   (f*c0 = 0)
    h_b = act_b[:, 3 * H:4 * H] * jnp.tanh(c_b)             # o * tanh(c)

    # ---- fc(concat(h_fwd, h_bwd)) + log_softmax ------------------------------
    logits = (jnp.dot(h, wfc_ref[0:H, :], preferred_element_type=jnp.float32)
              + jnp.dot(h_b, wfc_ref[H:2 * H, :],
                        preferred_element_type=jnp.float32)
              + bfc_ref[...])
    m = jnp.max(logits, axis=1, keepdims=True)
    shifted = logits - m
    lse = jnp.log(jnp.sum(jnp.exp(shifted), axis=1, keepdims=True))
    out_ref[...] = shifted - lse


def pack_params(params):
    """One-time repacking: pad to lane/sublane multiples, pack fwd/bwd input
    weights side by side, and fold the g-gate x2 pre-scale into the weights."""
    D, H4 = params["wih_f"].shape
    H = H4 // 4
    V = params["embed"].shape[0]
    Dp = ((D + 127) // 128) * 128
    Vp = ((V + 7) // 8) * 8

    def fold_g(w):
        """Multiply the g-gate columns ([2H:3H] of a 4H block) by 2."""
        w = jnp.asarray(w, jnp.float32)
        return w.at[..., 2 * H:3 * H].multiply(2.0)

    embed_p = jnp.zeros((Vp, Dp), jnp.float32).at[:V, :D].set(
        params["embed"].astype(jnp.float32))

    wih_p = jnp.zeros((Dp, 2 * H4), jnp.float32)
    wih_p = wih_p.at[:D, :H4].set(fold_g(params["wih_f"]))
    wih_p = wih_p.at[:D, H4:].set(fold_g(params["wih_b"]))

    b_p = jnp.concatenate(
        [fold_g(params["b_f"]), fold_g(params["b_b"])], axis=1)      # (1, 8H)

    return dict(embed=embed_p, wih=wih_p, b=b_p,
                whh_f=fold_g(params["whh_f"]),
                wfc=params["wfc"].astype(jnp.float32),
                bfc=params["bfc"].astype(jnp.float32))


def lstm_forward(tokens, packed):
    """Single fused kernel: embedding gather + bidirectional LSTM head."""
    T = tokens.shape[0]
    Dp = packed["embed"].shape[1]
    H4x2 = packed["wih"].shape[1]
    output_size = packed["wfc"].shape[1]

    vmem = lambda: pl.BlockSpec(memory_space=pltpu.MemorySpace.VMEM)
    return pl.pallas_call(
        _lstm_bidir_head_kernel,
        out_shape=jax.ShapeDtypeStruct((1, output_size), jnp.float32),
        in_specs=[
            pl.BlockSpec(memory_space=pltpu.MemorySpace.SMEM),   # token ids
            vmem(),                                              # embed table (VMEM)
            vmem(),                                              # wih packed
            vmem(),                                              # b packed
            vmem(),                                              # whh_f
            vmem(),                                              # wfc
            vmem(),                                              # bfc
        ],
        out_specs=vmem(),
        scratch_shapes=[
            pltpu.VMEM((T, Dp), jnp.float32),                    # gathered x
            pltpu.VMEM((T, H4x2), jnp.float32),                  # gates_x
        ],
    )(tokens.astype(jnp.int32), packed["embed"], packed["wih"], packed["b"],
      packed["whh_f"], packed["wfc"], packed["bfc"])


def _reference(tokens, params):
    """Pure-JAX full bidirectional LSTM + fc + log_softmax (silent check)."""
    x = params["embed"][tokens].astype(jnp.float32)
    H = params["whh_f"].shape[0]

    def cell(carry, x_t, wih, whh, b):
        h, c = carry
        gates = x_t @ wih + h @ whh + b
        i = jax.nn.sigmoid(gates[:, :H])
        f = jax.nn.sigmoid(gates[:, H:2 * H])
        g = jnp.tanh(gates[:, 2 * H:3 * H])
        o = jax.nn.sigmoid(gates[:, 3 * H:])
        c = f * c + i * g
        h = o * jnp.tanh(c)
        return (h, c), h

    h0 = jnp.zeros((1, H), jnp.float32)
    c0 = jnp.zeros((1, H), jnp.float32)

    def scan_dir(xs, wih, whh, b):
        def f(carry, x_t):
            return cell(carry, x_t[None, :], wih, whh, b)
        _, hs = jax.lax.scan(f, (h0, c0), xs)
        return hs[:, 0, :]

    h_f = scan_dir(x, params["wih_f"], params["whh_f"], params["b_f"])
    h_b = scan_dir(x[::-1], params["wih_b"], params["whh_b"], params["b_b"])[::-1]
    last = jnp.concatenate([h_f[-1], h_b[-1]])[None, :]
    logits = last @ params["wfc"] + params["bfc"]
    return jax.nn.log_softmax(logits, axis=1)


if __name__ == "__main__":
    vocab_size = 50
    vector_size = 100          # embedding dim == LSTM input_size
    hidden_size = 32
    output_size = 16
    seq_len = 8

    key = jax.random.PRNGKey(0)
    keys = jax.random.split(key, 10)
    s = 1.0 / (hidden_size ** 0.5)

    def u(k, shape):
        return jax.random.uniform(k, shape, jnp.float32, -s, s)

    params = dict(
        embed=jax.random.normal(keys[0], (vocab_size, vector_size), jnp.float32),
        wih_f=u(keys[1], (vector_size, 4 * hidden_size)),
        whh_f=u(keys[2], (hidden_size, 4 * hidden_size)),
        b_f=u(keys[3], (1, 4 * hidden_size)),
        wih_b=u(keys[4], (vector_size, 4 * hidden_size)),
        whh_b=u(keys[5], (hidden_size, 4 * hidden_size)),
        b_b=u(keys[6], (1, 4 * hidden_size)),
        wfc=u(keys[7], (2 * hidden_size, output_size)),
        bfc=u(keys[8], (1, output_size)),
    )
    tokens = jax.random.randint(keys[9], (seq_len,), 0, vocab_size, dtype=jnp.int32)

    packed = jax.tree_util.tree_map(jax.block_until_ready, pack_params(params))

    out = jax.block_until_ready(lstm_forward(tokens, packed))
    ref = _reference(tokens, params)

    assert out.shape == (1, output_size)
    assert jnp.allclose(out, ref, atol=1e-4, rtol=1e-4)
    print("KERNEL_OK")
</pallas_src>

<mosaic_0001>
module attributes {stable_mosaic.version = 11 : i64} {
  func.func @_lstm_bidir_head_kernel(%arg0: memref<8xi32, #tpu.memory_space<smem>>, %arg1: memref<56x128xf32, #tpu.memory_space<vmem>>, %arg2: memref<128x256xf32, #tpu.memory_space<vmem>>, %arg3: memref<1x256xf32, #tpu.memory_space<vmem>>, %arg4: memref<32x128xf32, #tpu.memory_space<vmem>>, %arg5: memref<64x16xf32, #tpu.memory_space<vmem>>, %arg6: memref<1x16xf32, #tpu.memory_space<vmem>>, %arg7: memref<1x16xf32, #tpu.memory_space<vmem>>, %arg8: memref<8x128xf32, #tpu.memory_space<vmem>>, %arg9: memref<8x256xf32, #tpu.memory_space<vmem>>) attributes {dimension_semantics = [], scalar_prefetch = 0 : i64, scratch_operands = 2 : i64, tpu.core_type = #tpu.core_type<tc>} {
    %c0 = arith.constant 0 : index
    %0 = memref.load %arg0[%c0] : memref<8xi32, #tpu.memory_space<smem>>
    %1 = arith.index_cast %0 : i32 to index
    %c0_0 = arith.constant 0 : index
    %2 = vector.load %arg1[%1, %c0_0] : memref<56x128xf32, #tpu.memory_space<vmem>>, vector<1x128xf32>
    %c0_1 = arith.constant 0 : index
    %c0_2 = arith.constant 0 : index
    %3 = vector.load %arg8[%c0_1, %c0_2] : memref<8x128xf32, #tpu.memory_space<vmem>>, vector<1x128xf32>
    tpu.vector_store %arg8[%c0_1, %c0_2], %2 {strides = array<i32>} : memref<8x128xf32, #tpu.memory_space<vmem>>, vector<1x128xf32>,
    %c1 = arith.constant 1 : index
    %4 = memref.load %arg0[%c1] : memref<8xi32, #tpu.memory_space<smem>>
    %5 = arith.index_cast %4 : i32 to index
    %c0_3 = arith.constant 0 : index
    %6 = vector.load %arg1[%5, %c0_3] : memref<56x128xf32, #tpu.memory_space<vmem>>, vector<1x128xf32>
    %c1_4 = arith.constant 1 : index
    %c0_5 = arith.constant 0 : index
    %7 = vector.load %arg8[%c1_4, %c0_5] : memref<8x128xf32, #tpu.memory_space<vmem>>, vector<1x128xf32>
    tpu.vector_store %arg8[%c1_4, %c0_5], %6 {strides = array<i32>} : memref<8x128xf32, #tpu.memory_space<vmem>>, vector<1x128xf32>,
    %c2 = arith.constant 2 : index
    %8 = memref.load %arg0[%c2] : memref<8xi32, #tpu.memory_space<smem>>
    %9 = arith.index_cast %8 : i32 to index
    %c0_6 = arith.constant 0 : index
    %10 = vector.load %arg1[%9, %c0_6] : memref<56x128xf32, #tpu.memory_space<vmem>>, vector<1x128xf32>
    %c2_7 = arith.constant 2 : index
    %c0_8 = arith.constant 0 : index
    %11 = vector.load %arg8[%c2_7, %c0_8] : memref<8x128xf32, #tpu.memory_space<vmem>>, vector<1x128xf32>
    tpu.vector_store %arg8[%c2_7, %c0_8], %10 {strides = array<i32>} : memref<8x128xf32, #tpu.memory_space<vmem>>, vector<1x128xf32>,
    %c3 = arith.constant 3 : index
    %12 = memref.load %arg0[%c3] : memref<8xi32, #tpu.memory_space<smem>>
    %13 = arith.index_cast %12 : i32 to index
    %c0_9 = arith.constant 0 : index
    %14 = vector.load %arg1[%13, %c0_9] : memref<56x128xf32, #tpu.memory_space<vmem>>, vector<1x128xf32>
    %c3_10 = arith.constant 3 : index
    %c0_11 = arith.constant 0 : index
    %15 = vector.load %arg8[%c3_10, %c0_11] : memref<8x128xf32, #tpu.memory_space<vmem>>, vector<1x128xf32>
    tpu.vector_store %arg8[%c3_10, %c0_11], %14 {strides = array<i32>} : memref<8x128xf32, #tpu.memory_space<vmem>>, vector<1x128xf32>,
    %c4 = arith.constant 4 : index
    %16 = memref.load %arg0[%c4] : memref<8xi32, #tpu.memory_space<smem>>
    %17 = arith.index_cast %16 : i32 to index
    %c0_12 = arith.constant 0 : index
    %18 = vector.load %arg1[%17, %c0_12] : memref<56x128xf32, #tpu.memory_space<vmem>>, vector<1x128xf32>
    %c4_13 = arith.constant 4 : index
    %c0_14 = arith.constant 0 : index
    %19 = vector.load %arg8[%c4_13, %c0_14] : memref<8x128xf32, #tpu.memory_space<vmem>>, vector<1x128xf32>
    tpu.vector_store %arg8[%c4_13, %c0_14], %18 {strides = array<i32>} : memref<8x128xf32, #tpu.memory_space<vmem>>, vector<1x128xf32>,
    %c5 = arith.constant 5 : index
    %20 = memref.load %arg0[%c5] : memref<8xi32, #tpu.memory_space<smem>>
    %21 = arith.index_cast %20 : i32 to index
    %c0_15 = arith.constant 0 : index
    %22 = vector.load %arg1[%21, %c0_15] : memref<56x128xf32, #tpu.memory_space<vmem>>, vector<1x128xf32>
    %c5_16 = arith.constant 5 : index
    %c0_17 = arith.constant 0 : index
    %23 = vector.load %arg8[%c5_16, %c0_17] : memref<8x128xf32, #tpu.memory_space<vmem>>, vector<1x128xf32>
    tpu.vector_store %arg8[%c5_16, %c0_17], %22 {strides = array<i32>} : memref<8x128xf32, #tpu.memory_space<vmem>>, vector<1x128xf32>,
    %c6 = arith.constant 6 : index
    %24 = memref.load %arg0[%c6] : memref<8xi32, #tpu.memory_space<smem>>
    %25 = arith.index_cast %24 : i32 to index
    %c0_18 = arith.constant 0 : index
    %26 = vector.load %arg1[%25, %c0_18] : memref<56x128xf32, #tpu.memory_space<vmem>>, vector<1x128xf32>
    %c6_19 = arith.constant 6 : index
    %c0_20 = arith.constant 0 : index
    %27 = vector.load %arg8[%c6_19, %c0_20] : memref<8x128xf32, #tpu.memory_space<vmem>>, vector<1x128xf32>
    tpu.vector_store %arg8[%c6_19, %c0_20], %26 {strides = array<i32>} : memref<8x128xf32, #tpu.memory_space<vmem>>, vector<1x128xf32>,
    %c7 = arith.constant 7 : index
    %28 = memref.load %arg0[%c7] : memref<8xi32, #tpu.memory_space<smem>>
    %29 = arith.index_cast %28 : i32 to index
    %c0_21 = arith.constant 0 : index
    %30 = vector.load %arg1[%29, %c0_21] : memref<56x128xf32, #tpu.memory_space<vmem>>, vector<1x128xf32>
    %c7_22 = arith.constant 7 : index
    %c0_23 = arith.constant 0 : index
    %31 = vector.load %arg8[%c7_22, %c0_23] : memref<8x128xf32, #tpu.memory_space<vmem>>, vector<1x128xf32>
    tpu.vector_store %arg8[%c7_22, %c0_23], %30 {strides = array<i32>} : memref<8x128xf32, #tpu.memory_space<vmem>>, vector<1x128xf32>,
    %c0_24 = arith.constant 0 : index
    %c0_25 = arith.constant 0 : index
    %32 = vector.load %arg8[%c0_24, %c0_25] : memref<8x128xf32, #tpu.memory_space<vmem>>, vector<8x128xf32>
    %c0_26 = arith.constant 0 : index
    %c0_27 = arith.constant 0 : index
    %33 = vector.load %arg2[%c0_26, %c0_27] : memref<128x256xf32, #tpu.memory_space<vmem>>, vector<128x256xf32>
    %cst = arith.constant dense<0.000000e+00> : vector<8x256xf32>
    %34 = tpu.matmul %32, %33, %cst {dimension_numbers = #tpu.dot_dimension_numbers<[1], [0], [0], [1], [0, 0, 1, 1], [], []>} : vector<8x128xf32>, vector<128x256xf32>, vector<8x256xf32> -> vector<8x256xf32>
    %c0_28 = arith.constant 0 : index
    %c0_29 = arith.constant 0 : index
    %35 = vector.load %arg3[%c0_28, %c0_29] : memref<1x256xf32, #tpu.memory_space<vmem>>, vector<1x256xf32>
    %36 = vector.broadcast %35 : vector<1x256xf32> to vector<8x256xf32>
    %37 = arith.addf %34, %36 : vector<8x256xf32>
    %c0_30 = arith.constant 0 : index
    %c0_31 = arith.constant 0 : index
    %38 = vector.load %arg9[%c0_30, %c0_31] : memref<8x256xf32, #tpu.memory_space<vmem>>, vector<8x256xf32>
    tpu.vector_store %arg9[%c0_30, %c0_31], %37 {strides = array<i32>} : memref<8x256xf32, #tpu.memory_space<vmem>>, vector<8x256xf32>,
    %39 = tpu.iota {dimensions = array<i32: 1>} : vector<1x128xi32>
    %c64_i32 = arith.constant 64 : i32
    %40 = vector.broadcast %c64_i32 : i32 to vector<1x128xi32>
    %41 = arith.cmpi sge, %39, %40 : vector<1x128xi32>
    %c96_i32 = arith.constant 96 : i32
    %42 = vector.broadcast %c96_i32 : i32 to vector<1x128xi32>
    %43 = arith.cmpi slt, %39, %42 : vector<1x128xi32>
    %44 = arith.andi %41, %43 : vector<1x128xi1>
    %cst_32 = arith.constant 2.000000e+00 : f32
    %cst_33 = arith.constant 1.000000e+00 : f32
    %45 = vector.broadcast %cst_32 : f32 to vector<1x128xf32>
    %46 = vector.broadcast %cst_33 : f32 to vector<1x128xf32>
    %47 = arith.select %44, %45, %46 : vector<1x128xi1>, vector<1x128xf32>
    %cst_34 = arith.constant -1.000000e+00 : f32
    %cst_35 = arith.constant 0.000000e+00 : f32
    %48 = vector.broadcast %cst_34 : f32 to vector<1x128xf32>
    %49 = vector.broadcast %cst_35 : f32 to vector<1x128xf32>
    %50 = arith.select %44, %48, %49 : vector<1x128xi1>, vector<1x128xf32>
    %c0_36 = arith.constant 0 : index
    %c0_37 = arith.constant 0 : index
    %51 = vector.load %arg4[%c0_36, %c0_37] : memref<32x128xf32, #tpu.memory_space<vmem>>, vector<32x128xf32>
    %cst_38 = arith.constant 0.000000e+00 : f32
    %52 = vector.broadcast %cst_38 : f32 to vector<1x32xf32>
    %cst_39 = arith.constant 0.000000e+00 : f32
    %53 = vector.broadcast %cst_39 : f32 to vector<1x32xf32>
    %c0_40 = arith.constant 0 : index
    %c0_41 = arith.constant 0 : index
    %54 = vector.load %arg9[%c0_40, %c0_41] : memref<8x256xf32, #tpu.memory_space<vmem>>, vector<1x128xf32>
    %cst_42 = arith.constant dense<0.000000e+00> : vector<1x128xf32>
    %55 = tpu.matmul %52, %51, %cst_42 {dimension_numbers = #tpu.dot_dimension_numbers<[1], [0], [0], [1], [0, 0, 1, 1], [], []>} : vector<1x32xf32>, vector<32x128xf32>, vector<1x128xf32> -> vector<1x128xf32>
    %56 = arith.addf %54, %55 : vector<1x128xf32>
    %57 = arith.negf %56 : vector<1x128xf32>
    %58 = math.exp %57 : vector<1x128xf32>
    %cst_43 = arith.constant 1.000000e+00 : f32
    %59 = vector.broadcast %cst_43 : f32 to vector<1x128xf32>
    %60 = arith.addf %59, %58 : vector<1x128xf32>
    %61 = arith.divf %59, %60 : vector<1x128xf32>
    %62 = arith.mulf %61, %47 : vector<1x128xf32>
    %63 = arith.addf %62, %50 : vector<1x128xf32>
    %64 = vector.extract_strided_slice %63 {offsets = [0, 0], sizes = [1, 32], strides = [1, 1]} : vector<1x128xf32> to vector<1x32xf32>
    %65 = vector.extract_strided_slice %63 {offsets = [0, 32], sizes = [1, 32], strides = [1, 1]} : vector<1x128xf32> to vector<1x32xf32>
    %66 = vector.extract_strided_slice %63 {offsets = [0, 64], sizes = [1, 32], strides = [1, 1]} : vector<1x128xf32> to vector<1x32xf32>
    %67 = vector.extract_strided_slice %63 {offsets = [0, 96], sizes = [1, 32], strides = [1, 1]} : vector<1x128xf32> to vector<1x32xf32>
    %68 = arith.mulf %65, %53 : vector<1x32xf32>
    %69 = arith.mulf %64, %66 : vector<1x32xf32>
    %70 = arith.addf %68, %69 : vector<1x32xf32>
    %71 = math.tanh %70 : vector<1x32xf32>
    %72 = arith.mulf %67, %71 : vector<1x32xf32>
    %c1_44 = arith.constant 1 : index
    %c0_45 = arith.constant 0 : index
    %73 = vector.load %arg9[%c1_44, %c0_45] : memref<8x256xf32, #tpu.memory_space<vmem>>, vector<1x128xf32>
    %cst_46 = arith.constant dense<0.000000e+00> : vector<1x128xf32>
    %74 = tpu.matmul %72, %51, %cst_46 {dimension_numbers = #tpu.dot_dimension_numbers<[1], [0], [0], [1], [0, 0, 1, 1], [], []>} : vector<1x32xf32>, vector<32x128xf32>, vector<1x128xf32> -> vector<1x128xf32>
    %75 = arith.addf %73, %74 : vector<1x128xf32>
    %76 = arith.negf %75 : vector<1x128xf32>
    %77 = math.exp %76 : vector<1x128xf32>
    %cst_47 = arith.constant 1.000000e+00 : f32
    %78 = vector.broadcast %cst_47 : f32 to vector<1x128xf32>
    %79 = arith.addf %78, %77 : vector<1x128xf32>
    %80 = arith.divf %78, %79 : vector<1x128xf32>
    %81 = arith.mulf %80, %47 : vector<1x128xf32>
    %82 = arith.addf %81, %50 : vector<1x128xf32>
    %83 = vector.extract_strided_slice %82 {offsets = [0, 0], sizes = [1, 32], strides = [1, 1]} : vector<1x128xf32> to vector<1x32xf32>
    %84 = vector.extract_strided_slice %82 {offsets = [0, 32], sizes = [1, 32], strides = [1, 1]} : vector<1x128xf32> to vector<1x32xf32>
    %85 = vector.extract_strided_slice %82 {offsets = [0, 64], sizes = [1, 32], strides = [1, 1]} : vector<1x128xf32> to vector<1x32xf32>
    %86 = vector.extract_strided_slice %82 {offsets = [0, 96], sizes = [1, 32], strides = [1, 1]} : vector<1x128xf32> to vector<1x32xf32>
    %87 = arith.mulf %84, %70 : vector<1x32xf32>
    %88 = arith.mulf %83, %85 : vector<1x32xf32>
    %89 = arith.addf %87, %88 : vector<1x32xf32>
    %90 = math.tanh %89 : vector<1x32xf32>
    %91 = arith.mulf %86, %90 : vector<1x32xf32>
    %c2_48 = arith.constant 2 : index
    %c0_49 = arith.constant 0 : index
    %92 = vector.load %arg9[%c2_48, %c0_49] : memref<8x256xf32, #tpu.memory_space<vmem>>, vector<1x128xf32>
    %cst_50 = arith.constant dense<0.000000e+00> : vector<1x128xf32>
    %93 = tpu.matmul %91, %51, %cst_50 {dimension_numbers = #tpu.dot_dimension_numbers<[1], [0], [0], [1], [0, 0, 1, 1], [], []>} : vector<1x32xf32>, vector<32x128xf32>, vector<1x128xf32> -> vector<1x128xf32>
    %94 = arith.addf %92, %93 : vector<1x128xf32>
    %95 = arith.negf %94 : vector<1x128xf32>
    %96 = math.exp %95 : vector<1x128xf32>
    %cst_51 = arith.constant 1.000000e+00 : f32
    %97 = vector.broadcast %cst_51 : f32 to vector<1x128xf32>
    %98 = arith.addf %97, %96 : vector<1x128xf32>
    %99 = arith.divf %97, %98 : vector<1x128xf32>
    %100 = arith.mulf %99, %47 : vector<1x128xf32>
    %101 = arith.addf %100, %50 : vector<1x128xf32>
    %102 = vector.extract_strided_slice %101 {offsets = [0, 0], sizes = [1, 32], strides = [1, 1]} : vector<1x128xf32> to vector<1x32xf32>
    %103 = vector.extract_strided_slice %101 {offsets = [0, 32], sizes = [1, 32], strides = [1, 1]} : vector<1x128xf32> to vector<1x32xf32>
    %104 = vector.extract_strided_slice %101 {offsets = [0, 64], sizes = [1, 32], strides = [1, 1]} : vector<1x128xf32> to vector<1x32xf32>
    %105 = vector.extract_strided_slice %101 {offsets = [0, 96], sizes = [1, 32], strides = [1, 1]} : vector<1x128xf32> to vector<1x32xf32>
    %106 = arith.mulf %103, %89 : vector<1x32xf32>
    %107 = arith.mulf %102, %104 : vector<1x32xf32>
    %108 = arith.addf %106, %107 : vector<1x32xf32>
    %109 = math.tanh %108 : vector<1x32xf32>
    %110 = arith.mulf %105, %109 : vector<1x32xf32>
    %c3_52 = arith.constant 3 : index
    %c0_53 = arith.constant 0 : index
    %111 = vector.load %arg9[%c3_52, %c0_53] : memref<8x256xf32, #tpu.memory_space<vmem>>, vector<1x128xf32>
    %cst_54 = arith.constant dense<0.000000e+00> : vector<1x128xf32>
    %112 = tpu.matmul %110, %51, %cst_54 {dimension_numbers = #tpu.dot_dimension_numbers<[1], [0], [0], [1], [0, 0, 1, 1], [], []>} : vector<1x32xf32>, vector<32x128xf32>, vector<1x128xf32> -> vector<1x128xf32>
    %113 = arith.addf %111, %112 : vector<1x128xf32>
    %114 = arith.negf %113 : vector<1x128xf32>
    %115 = math.exp %114 : vector<1x128xf32>
    %cst_55 = arith.constant 1.000000e+00 : f32
    %116 = vector.broadcast %cst_55 : f32 to vector<1x128xf32>
    %117 = arith.addf %116, %115 : vector<1x128xf32>
    %118 = arith.divf %116, %117 : vector<1x128xf32>
    %119 = arith.mulf %118, %47 : vector<1x128xf32>
    %120 = arith.addf %119, %50 : vector<1x128xf32>
    %121 = vector.extract_strided_slice %120 {offsets = [0, 0], sizes = [1, 32], strides = [1, 1]} : vector<1x128xf32> to vector<1x32xf32>
    %122 = vector.extract_strided_slice %120 {offsets = [0, 32], sizes = [1, 32], strides = [1, 1]} : vector<1x128xf32> to vector<1x32xf32>
    %123 = vector.extract_strided_slice %120 {offsets = [0, 64], sizes = [1, 32], strides = [1, 1]} : vector<1x128xf32> to vector<1x32xf32>
    %124 = vector.extract_strided_slice %120 {offsets = [0, 96], sizes = [1, 32], strides = [1, 1]} : vector<1x128xf32> to vector<1x32xf32>
    %125 = arith.mulf %122, %108 : vector<1x32xf32>
    %126 = arith.mulf %121, %123 : vector<1x32xf32>
    %127 = arith.addf %125, %126 : vector<1x32xf32>
    %128 = math.tanh %127 : vector<1x32xf32>
    %129 = arith.mulf %124, %128 : vector<1x32xf32>
    %c4_56 = arith.constant 4 : index
    %c0_57 = arith.constant 0 : index
    %130 = vector.load %arg9[%c4_56, %c0_57] : memref<8x256xf32, #tpu.memory_space<vmem>>, vector<1x128xf32>
    %cst_58 = arith.constant dense<0.000000e+00> : vector<1x128xf32>
    %131 = tpu.matmul %129, %51, %cst_58 {dimension_numbers = #tpu.dot_dimension_numbers<[1], [0], [0], [1], [0, 0, 1, 1], [], []>} : vector<1x32xf32>, vector<32x128xf32>, vector<1x128xf32> -> vector<1x128xf32>
    %132 = arith.addf %130, %131 : vector<1x128xf32>
    %133 = arith.negf %132 : vector<1x128xf32>
    %134 = math.exp %133 : vector<1x128xf32>
    %cst_59 = arith.constant 1.000000e+00 : f32
    %135 = vector.broadcast %cst_59 : f32 to vector<1x128xf32>
    %136 = arith.addf %135, %134 : vector<1x128xf32>
    %137 = arith.divf %135, %136 : vector<1x128xf32>
    %138 = arith.mulf %137, %47 : vector<1x128xf32>
    %139 = arith.addf %138, %50 : vector<1x128xf32>
    %140 = vector.extract_strided_slice %139 {offsets = [0, 0], sizes = [1, 32], strides = [1, 1]} : vector<1x128xf32> to vector<1x32xf32>
    %141 = vector.extract_strided_slice %139 {offsets = [0, 32], sizes = [1, 32], strides = [1, 1]} : vector<1x128xf32> to vector<1x32xf32>
    %142 = vector.extract_strided_slice %139 {offsets = [0, 64], sizes = [1, 32], strides = [1, 1]} : vector<1x128xf32> to vector<1x32xf32>
    %143 = vector.extract_strided_slice %139 {offsets = [0, 96], sizes = [1, 32], strides = [1, 1]} : vector<1x128xf32> to vector<1x32xf32>
    %144 = arith.mulf %141, %127 : vector<1x32xf32>
    %145 = arith.mulf %140, %142 : vector<1x32xf32>
    %146 = arith.addf %144, %145 : vector<1x32xf32>
    %147 = math.tanh %146 : vector<1x32xf32>
    %148 = arith.mulf %143, %147 : vector<1x32xf32>
    %c5_60 = arith.constant 5 : index
    %c0_61 = arith.constant 0 : index
    %149 = vector.load %arg9[%c5_60, %c0_61] : memref<8x256xf32, #tpu.memory_space<vmem>>, vector<1x128xf32>
    %cst_62 = arith.constant dense<0.000000e+00> : vector<1x128xf32>
    %150 = tpu.matmul %148, %51, %cst_62 {dimension_numbers = #tpu.dot_dimension_numbers<[1], [0], [0], [1], [0, 0, 1, 1], [], []>} : vector<1x32xf32>, vector<32x128xf32>, vector<1x128xf32> -> vector<1x128xf32>
    %151 = arith.addf %149, %150 : vector<1x128xf32>
    %152 = arith.negf %151 : vector<1x128xf32>
    %153 = math.exp %152 : vector<1x128xf32>
    %cst_63 = arith.constant 1.000000e+00 : f32
    %154 = vector.broadcast %cst_63 : f32 to vector<1x128xf32>
    %155 = arith.addf %154, %153 : vector<1x128xf32>
    %156 = arith.divf %154, %155 : vector<1x128xf32>
    %157 = arith.mulf %156, %47 : vector<1x128xf32>
    %158 = arith.addf %157, %50 : vector<1x128xf32>
    %159 = vector.extract_strided_slice %158 {offsets = [0, 0], sizes = [1, 32], strides = [1, 1]} : vector<1x128xf32> to vector<1x32xf32>
    %160 = vector.extract_strided_slice %158 {offsets = [0, 32], sizes = [1, 32], strides = [1, 1]} : vector<1x128xf32> to vector<1x32xf32>
    %161 = vector.extract_strided_slice %158 {offsets = [0, 64], sizes = [1, 32], strides = [1, 1]} : vector<1x128xf32> to vector<1x32xf32>
    %162 = vector.extract_strided_slice %158 {offsets = [0, 96], sizes = [1, 32], strides = [1, 1]} : vector<1x128xf32> to vector<1x32xf32>
    %163 = arith.mulf %160, %146 : vector<1x32xf32>
    %164 = arith.mulf %159, %161 : vector<1x32xf32>
    %165 = arith.addf %163, %164 : vector<1x32xf32>
    %166 = math.tanh %165 : vector<1x32xf32>
    %167 = arith.mulf %162, %166 : vector<1x32xf32>
    %c6_64 = arith.constant 6 : index
    %c0_65 = arith.constant 0 : index
    %168 = vector.load %arg9[%c6_64, %c0_65] : memref<8x256xf32, #tpu.memory_space<vmem>>, vector<1x128xf32>
    %cst_66 = arith.constant dense<0.000000e+00> : vector<1x128xf32>
    %169 = tpu.matmul %167, %51, %cst_66 {dimension_numbers = #tpu.dot_dimension_numbers<[1], [0], [0], [1], [0, 0, 1, 1], [], []>} : vector<1x32xf32>, vector<32x128xf32>, vector<1x128xf32> -> vector<1x128xf32>
    %170 = arith.addf %168, %169 : vector<1x128xf32>
    %171 = arith.negf %170 : vector<1x128xf32>
    %172 = math.exp %171 : vector<1x128xf32>
    %cst_67 = arith.constant 1.000000e+00 : f32
    %173 = vector.broadcast %cst_67 : f32 to vector<1x128xf32>
    %174 = arith.addf %173, %172 : vector<1x128xf32>
    %175 = arith.divf %173, %174 : vector<1x128xf32>
    %176 = arith.mulf %175, %47 : vector<1x128xf32>
    %177 = arith.addf %176, %50 : vector<1x128xf32>
    %178 = vector.extract_strided_slice %177 {offsets = [0, 0], sizes = [1, 32], strides = [1, 1]} : vector<1x128xf32> to vector<1x32xf32>
    %179 = vector.extract_strided_slice %177 {offsets = [0, 32], sizes = [1, 32], strides = [1, 1]} : vector<1x128xf32> to vector<1x32xf32>
    %180 = vector.extract_strided_slice %177 {offsets = [0, 64], sizes = [1, 32], strides = [1, 1]} : vector<1x128xf32> to vector<1x32xf32>
    %181 = vector.extract_strided_slice %177 {offsets = [0, 96], sizes = [1, 32], strides = [1, 1]} : vector<1x128xf32> to vector<1x32xf32>
    %182 = arith.mulf %179, %165 : vector<1x32xf32>
    %183 = arith.mulf %178, %180 : vector<1x32xf32>
    %184 = arith.addf %182, %183 : vector<1x32xf32>
    %185 = math.tanh %184 : vector<1x32xf32>
    %186 = arith.mulf %181, %185 : vector<1x32xf32>
    %c7_68 = arith.constant 7 : index
    %c0_69 = arith.constant 0 : index
    %187 = vector.load %arg9[%c7_68, %c0_69] : memref<8x256xf32, #tpu.memory_space<vmem>>, vector<1x128xf32>
    %cst_70 = arith.constant dense<0.000000e+00> : vector<1x128xf32>
    %188 = tpu.matmul %186, %51, %cst_70 {dimension_numbers = #tpu.dot_dimension_numbers<[1], [0], [0], [1], [0, 0, 1, 1], [], []>} : vector<1x32xf32>, vector<32x128xf32>, vector<1x128xf32> -> vector<1x128xf32>
    %189 = arith.addf %187, %188 : vector<1x128xf32>
    %190 = arith.negf %189 : vector<1x128xf32>
    %191 = math.exp %190 : vector<1x128xf32>
    %cst_71 = arith.constant 1.000000e+00 : f32
    %192 = vector.broadcast %cst_71 : f32 to vector<1x128xf32>
    %193 = arith.addf %192, %191 : vector<1x128xf32>
    %194 = arith.divf %192, %193 : vector<1x128xf32>
    %195 = arith.mulf %194, %47 : vector<1x128xf32>
    %196 = arith.addf %195, %50 : vector<1x128xf32>
    %197 = vector.extract_strided_slice %196 {offsets = [0, 0], sizes = [1, 32], strides = [1, 1]} : vector<1x128xf32> to vector<1x32xf32>
    %198 = vector.extract_strided_slice %196 {offsets = [0, 32], sizes = [1, 32], strides = [1, 1]} : vector<1x128xf32> to vector<1x32xf32>
    %199 = vector.extract_strided_slice %196 {offsets = [0, 64], sizes = [1, 32], strides = [1, 1]} : vector<1x128xf32> to vector<1x32xf32>
    %200 = vector.extract_strided_slice %196 {offsets = [0, 96], sizes = [1, 32], strides = [1, 1]} : vector<1x128xf32> to vector<1x32xf32>
    %201 = arith.mulf %198, %184 : vector<1x32xf32>
    %202 = arith.mulf %197, %199 : vector<1x32xf32>
    %203 = arith.addf %201, %202 : vector<1x32xf32>
    %204 = math.tanh %203 : vector<1x32xf32>
    %205 = arith.mulf %200, %204 : vector<1x32xf32>
    %c7_72 = arith.constant 7 : index
    %c128 = arith.constant 128 : index
    %206 = vector.load %arg9[%c7_72, %c128] : memref<8x256xf32, #tpu.memory_space<vmem>>, vector<1x128xf32>
    %207 = arith.negf %206 : vector<1x128xf32>
    %208 = math.exp %207 : vector<1x128xf32>
    %cst_73 = arith.constant 1.000000e+00 : f32
    %209 = vector.broadcast %cst_73 : f32 to vector<1x128xf32>
    %210 = arith.addf %209, %208 : vector<1x128xf32>
    %211 = arith.divf %209, %210 : vector<1x128xf32>
    %212 = arith.mulf %211, %47 : vector<1x128xf32>
    %213 = arith.addf %212, %50 : vector<1x128xf32>
    %214 = vector.extract_strided_slice %213 {offsets = [0, 0], sizes = [1, 32], strides = [1, 1]} : vector<1x128xf32> to vector<1x32xf32>
    %215 = vector.extract_strided_slice %213 {offsets = [0, 64], sizes = [1, 32], strides = [1, 1]} : vector<1x128xf32> to vector<1x32xf32>
    %216 = arith.mulf %214, %215 : vector<1x32xf32>
    %217 = vector.extract_strided_slice %213 {offsets = [0, 96], sizes = [1, 32], strides = [1, 1]} : vector<1x128xf32> to vector<1x32xf32>
    %218 = math.tanh %216 : vector<1x32xf32>
    %219 = arith.mulf %217, %218 : vector<1x32xf32>
    %c0_74 = arith.constant 0 : index
    %c0_75 = arith.constant 0 : index
    %220 = vector.load %arg5[%c0_74, %c0_75] : memref<64x16xf32, #tpu.memory_space<vmem>>, vector<32x16xf32>
    %cst_76 = arith.constant dense<0.000000e+00> : vector<1x16xf32>
    %221 = tpu.matmul %205, %220, %cst_76 {dimension_numbers = #tpu.dot_dimension_numbers<[1], [0], [0], [1], [0, 0, 1, 1], [], []>} : vector<1x32xf32>, vector<32x16xf32>, vector<1x16xf32> -> vector<1x16xf32>
    %c32 = arith.constant 32 : index
    %c0_77 = arith.constant 0 : index
    %222 = vector.load %arg5[%c32, %c0_77] : memref<64x16xf32, #tpu.memory_space<vmem>>, vector<32x16xf32>
    %cst_78 = arith.constant dense<0.000000e+00> : vector<1x16xf32>
    %223 = tpu.matmul %219, %222, %cst_78 {dimension_numbers = #tpu.dot_dimension_numbers<[1], [0], [0], [1], [0, 0, 1, 1], [], []>} : vector<1x32xf32>, vector<32x16xf32>, vector<1x16xf32> -> vector<1x16xf32>
    %224 = arith.addf %221, %223 : vector<1x16xf32>
    %c0_79 = arith.constant 0 : index
    %c0_80 = arith.constant 0 : index
    %225 = vector.load %arg6[%c0_79, %c0_80] : memref<1x16xf32, #tpu.memory_space<vmem>>, vector<1x16xf32>
    %226 = arith.addf %224, %225 : vector<1x16xf32>
    %cst_81 = arith.constant dense<0xFF800000> : vector<1xf32>
    %227 = vector.multi_reduction <maximumf>, %226, %cst_81 [1] : vector<1x16xf32> to vector<1xf32>
    %228 = vector.shape_cast %227 : vector<1xf32> to vector<1x1xf32>
    %229 = vector.broadcast %228 : vector<1x1xf32> to vector<1x16xf32>
    %230 = arith.subf %226, %229 : vector<1x16xf32>
    %231 = math.exp %230 : vector<1x16xf32>
    %cst_82 = arith.constant dense<0.000000e+00> : vector<1xf32>
    %232 = vector.multi_reduction <add>, %231, %cst_82 [1] : vector<1x16xf32> to vector<1xf32>
    %233 = vector.shape_cast %232 : vector<1xf32> to vector<1x1xf32>
    %234 = math.log %233 : vector<1x1xf32>
    %235 = vector.broadcast %234 : vector<1x1xf32> to vector<1x16xf32>
    %236 = arith.subf %230, %235 : vector<1x16xf32>
    %c0_83 = arith.constant 0 : index
    %c0_84 = arith.constant 0 : index
    %237 = vector.load %arg7[%c0_83, %c0_84] : memref<1x16xf32, #tpu.memory_space<vmem>>, vector<1x16xf32>
    tpu.vector_store %arg7[%c0_83, %c0_84], %236 {strides = array<i32>} : memref<1x16xf32, #tpu.memory_space<vmem>>, vector<1x16xf32>,
    return
  }
}

</mosaic_0001>

<bundles_post_ra>
// kernel: tpu_custom_call.1
= control target key start
LH: loop header
LB: loop body
LE: loop exit
PB: predicated region body
PF: predicated region fallthrough
CT: control target
= control target key end

     0   :  { %12 = vsyncpa [#allocation7], 0  ;;  %s1957_s0 = inlined_call_operand.vmem [shape: s32[8], index: 0, kind: input, shape index: {}]   ;;  %s1958_s1 = inlined_call_operand.vmem [shape: f32[56,128], index: 1, kind: input, shape index: {}]   ;;  %s1959_s2 = inlined_call_operand.hbm [shape: f32[128,256], index: 2, kind: input, shape index: {}]   ;;  %s1960_s3 = inlined_call_operand.vmem [shape: f32[1,256], index: 3, kind: input, shape index: {}]   ;;  %s1961_s4 = inlined_call_operand.vmem [shape: f32[32,128], index: 4, kind: input, shape index: {}]   ;;  %s1962_s5 = inlined_call_operand.vmem [shape: f32[64,16], index: 5, kind: input, shape index: {}]   ;;  %s1963_s6 = inlined_call_operand.vmem [shape: f32[1,16], index: 6, kind: input, shape index: {}]   ;;  %s1964_s7 = inlined_call_operand.hbm [shape: f32[1,16], index: 7, kind: output, shape index: {}]  }
   0x1   :  { %13 = vsyncpa [#allocation5], 0 }
   0x2   :  { %14 = vsyncpa [#allocation6], 0  ;;  %s21_s26 = sshll.u32 %s1957_s0, 4  ;;  %s22_s26 = int_to_ptr.vmem [resolvable:$true] %s21_s26 }
   0x3   :  { %s1595_s27 = scalar_lea.vmem %s22_s26, 16  ;;  %p1600_p1 = scmp.lt.s32.totalorder %s22_s26, %s22_s26 }
   0x4   :  { %p1596_p0 = scmp.ne.s32.totalorder %s22_s26, %s1595_s27  ;;  %p1601_p2 = scmp.lt.s32.totalorder %s1595_s27, %s1595_s27 }
   0x6   :  { %p1602_p3 = por %p1601_p2, %p1600_p1 }
   0x8   :  { %p1603_p4 = pnand %p1602_p3, %p1596_p0 }
   0xa   :  { %1606 = shalt.err (!%p1603_p4)
}
   0xb   :  { %s1657_s28 = smov [#allocation4]   ;;  %s1658_s29 = smov [#allocation8]  }
   0xc   :  { %24 = dma.vmem_to_smem %s22_s26, 16, %s1657_s28, [#allocation7]  }
   0xd   :  { %s32_s30 = sshll.u32 %s1658_s29, 4  ;;  %s1607_s10 = scalar_lea.hbm %s1959_s2, 4096  ;;  %s33_s30 = int_to_ptr.vmem [resolvable:$true] %s32_s30 }
   0xe   :  { %p1608_p5 = scmp.ne.s32.totalorder %s1959_s2, %s1607_s10  ;;  %p1611_p6 = scmp.lt.u32.totalorder %s1607_s10, %s1959_s2 }
  0x10   :  { %p1613_p7 = pnand %p1611_p6, %p1608_p5 }
  0x12   :  { %1616 = shalt.err (!%p1613_p7)
}
  0x13   :  { %s1617_s14 = scalar_lea.vmem %s33_s30, 4096  ;;  %p1622_p9 = scmp.lt.s32.totalorder %s33_s30, %s33_s30 }
  0x14   :  { %p1618_p8 = scmp.ne.s32.totalorder %s33_s30, %s1617_s14  ;;  %p1623_p10 = scmp.lt.s32.totalorder %s1617_s14, %s1617_s14 }
  0x16   :  { %p1624_p11 = por %p1623_p10, %p1622_p9 }
  0x18   :  { %p1625_p12 = pnand %p1624_p11, %p1618_p8 }
  0x1a   :  { %1628 = shalt.err (!%p1625_p12)
}
  0x1b   :  { %s1659_s15 = smov 256   ;;  %s1660_s16 = smov 16  }
  0x1c   :  { %38 = dma.hbm_to_vmem [thread:$0]  %s1959_s2, 4096, %s33_s30, [#allocation5], %s1659_s15, %s1659_s15, %s1660_s16  }
  0x1d   :  { %1651 = dma.done.wait [#allocation7], 16  }
  0x1e   :  { %1652 = vsyncadd [#allocation7], 4294967280 }
  0x1f   :  { %1653 = dma.done.wait [#allocation5], 4096  }
  0x20   :  { %1654 = vsyncadd [#allocation5], 4294963200 }
  0x21   :  { %53 = sfence }
  0x22   :  { %v88_v0 = vld [vmem:[#allocation8 + $0x8] sm:$0xff]  ;;  %v90_v1 = vld [vmem:[#allocation8 + $0x18] sm:$0xff]  ;;  %v87_v2 = vld [vmem:[#allocation8] sm:$0xff]  ;;  %s1724_s19 = sld [smem:[#allocation4]]  ;;  %v1661_v7 = vmov 0.0   ;;  %s1727_s20 = sld [smem:[#allocation4 + $0x1]] }
  0x23   :  { %v1433_v3 = vpack.c.bf16 %v90_v1, %v88_v0  ;;  %v89_v4 = vld [vmem:[#allocation8 + $0x10] sm:$0xff]  ;;  %v92_v5 = vld [vmem:[#allocation8 + $0x28] sm:$0xff]  ;;  %v94_v6 = vld [vmem:[#allocation8 + $0x38] sm:$0xff]  ;;  %195 = vmatprep.mubr.f32.mxu0 %v1661_v7  ;;  %s1729_s2 = sld [smem:[#allocation4 + $0x2]]  ;;  %v1662_v13 = vmov 0.0|0.0   ;;  %s1732_s21 = sld [smem:[#allocation4 + $0x3]]  ;;  %v121_v1 = vlaneseq }
  0x24   :  { %v1435_v8 = vpack.c.bf16 %v89_v4, %v87_v2  ;;  %v1437_v9 = vpack.c.bf16 %v94_v6, %v92_v5  ;;  %v91_v10 = vld [vmem:[#allocation8 + $0x20] sm:$0xff]  ;;  %v93_v11 = vld [vmem:[#allocation8 + $0x30] sm:$0xff]  ;;  %v96_v12 = vld [vmem:[#allocation8 + $0x48] sm:$0xff]  ;;  %1465 = vmatprep.subr.bf16.mxu1 %v1662_v13  ;;  %vm1663_vm0 = vmmov 0   ;;  %s1736_s22 = sld [smem:[#allocation4 + $0x4]]  ;;  %s1738_s23 = sld [smem:[#allocation4 + $0x5]] }
  0x25   :  { %1434 = vmatprep.subr.bf16.mxu0 %v1433_v3  ;;  %v98_v14 = vld [vmem:[#allocation8 + $0x58] sm:$0xff]  ;;  %1331 = vmatprep.mubr.msk.f32.mxu1 %vm1663_vm0, %v1661_v7  ;;  %v1439_v15 = vpack.c.bf16 %v93_v11, %v91_v10  ;;  %v95_v17 = vld [vmem:[#allocation8 + $0x40] sm:$0xff]  ;;  %v97_v18 = vld [vmem:[#allocation8 + $0x50] sm:$0xff]  ;;  %s1740_s24 = sld [smem:[#allocation4 + $0x6]]  ;;  %s1746_s28 = sld [smem:[#allocation4 + $0x7]]  ;;  %v122_v3 = vshrl.u32 %v121_v1, 7 }
  0x26   :  { %1436 = vmatpush1.bf16.msra.mxu0 %v1435_v8  ;;  %v1441_v16 = vpack.c.bf16 %v98_v14, %v96_v12  ;;  %v100_v19 = vld [vmem:[#allocation8 + $0x68] sm:$0xff]  ;;  %v102_v20 = vld [vmem:[#allocation8 + $0x78] sm:$0xff]  ;;  %v1443_v21 = vpack.c.bf16 %v97_v18, %v95_v17  ;;  %v99_v23 = vld [vmem:[#allocation8 + $0x60] sm:$0xff]  ;;  %vm216_vm4 = vcmask 261120   ;;  %s1667_s14 = smov 96   ;;  %vm1210_vm5 = vcmask 122880  }
  0x27   :  { %1438 = vmatprep.subr.bf16.mxu0 %v1437_v9  ;;  %v1445_v22 = vpack.c.bf16 %v102_v20, %v100_v19  ;;  %v101_v24 = vld [vmem:[#allocation8 + $0x70] sm:$0xff]  ;;  %v104_v25 = vld [vmem:[#allocation8 + $0x88] sm:$0xff]  ;;  %v106_v26 = vld [vmem:[#allocation8 + $0x98] sm:$0xff]  ;;  %v123_v5 = vsub.s32 0, %v122_v3  ;;  %v127_v8 = vsub.s32 1, %v122_v3  ;;  %v205_v20 = vand.u32 127, %v121_v1 }
  0x28   :  { %s55_s27 = scalar_lea.vmem %s1958_s1, %s1724_s19  ;;  %s59_s8 = scalar_lea.vmem %s1958_s1, %s1727_s20  ;;  %v103_v28 = vld [vmem:[#allocation8 + $0x80] sm:$0xff]  ;;  %v105_v29 = vld [vmem:[#allocation8 + $0x90] sm:$0xff]  ;;  %v1447_v33 = vpack.c.bf16 %v101_v24, %v99_v23  ;;  %v108_v34 = vld [vmem:[#allocation8 + $0xa8] sm:$0xff]  ;;  %v1449_v38 = vpack.c.bf16 %v106_v26, %v104_v25 }
  0x29   :  { %s63_s11 = scalar_lea.vmem %s1958_s1, %s1729_s2  ;;  %s67_s13 = scalar_lea.vmem %s1958_s1, %s1732_s21  ;;  %v56_v27 = vld [vmem:[%s55_s27] sm:$0x1]  ;;  %v212_v40 = vld [vmem:[%s1961_s4 + $0x8] sm:$0xff]  ;;  %v213_v41 = vld [vmem:[%s1961_s4 + $0x10] sm:$0xff]  ;;  %v1451_v46 = vpack.c.bf16 %v105_v29, %v103_v28  ;;  %vm206_vm1 = vcmp.ge.s32.totalorder %v205_v20, 64  ;;  %vm207_vm2 = vcmp.lt.s32.totalorder %v205_v20, 96 }
  0x2a   :  { %1440 = vmatpush1.bf16.msra.mxu0 %v1439_v15  ;;  %s71_s16 = scalar_lea.vmem %s1958_s1, %s1736_s22  ;;  %57 = vst [vmem:[#allocation2] sm:$0x1] %v56_v27  ;;  %v60_v30 = vld [vmem:[%s59_s8] sm:$0x1]  ;;  %s75_s19 = scalar_lea.vmem %s1958_s1, %s1738_s23  ;;  %v110_v42 = vld [vmem:[#allocation8 + $0xb8] sm:$0xff]  ;;  %v214_v45 = vld [vmem:[%s1961_s4 + $0x18] sm:$0xff] }
  0x2b   :  { %1442 = vmatprep.subr.bf16.mxu0 %v1441_v16  ;;  %v64_v31 = vld [vmem:[%s63_s11] sm:$0x1]  ;;  %61 = vst [vmem:[#allocation2 + $0x1] sm:$0x1] %v60_v30  ;;  %s79_s21 = scalar_lea.vmem %s1958_s1, %s1740_s24  ;;  %s83_s27 = scalar_lea.vmem %s1958_s1, %s1746_s28  ;;  %v1791_v47 = vpack.c.bf16 %v214_v45, %v213_v41  ;;  %v1453_v48 = vpack.c.bf16 %v110_v42, %v108_v34  ;;  %v107_v49 = vld [vmem:[#allocation8 + $0xa0] sm:$0xff]  ;;  %v109_v50 = vld [vmem:[#allocation8 + $0xb0] sm:$0xff] }
  0x2c   :  { %v68_v32 = vld [vmem:[%s67_s13] sm:$0x1]  ;;  %65 = vst [vmem:[#allocation2 + $0x2] sm:$0x1] %v64_v31  ;;  %v114_v52 = vld [vmem:[#allocation8 + $0xd8] sm:$0xff]  ;;  %v1455_v53 = vpack.c.bf16 %v109_v50, %v107_v49  ;;  %v111_v55 = vld [vmem:[#allocation8 + $0xc0] sm:$0xff] }
  0x2d   :  { %69 = vst [vmem:[#allocation2 + $0x3] sm:$0x1] %v68_v32  ;;  %v72_v35 = vld [vmem:[%s71_s16] sm:$0x1]  ;;  %v113_v56 = vld [vmem:[#allocation8 + $0xd0] sm:$0xff]  ;;  %v118_v58 = vld [vmem:[#allocation8 + $0xf8] sm:$0xff] }
  0x2e   :  { %1444 = vmatpush1.bf16.msra.mxu0 %v1443_v21  ;;  %v76_v36 = vld [vmem:[%s75_s19] sm:$0x1]  ;;  %73 = vst [vmem:[#allocation2 + $0x4] sm:$0x1] %v72_v35  ;;  %v1459_v59 = vpack.c.bf16 %v113_v56, %v111_v55  ;;  %v115_v61 = vld [vmem:[#allocation8 + $0xe0] sm:$0xff]  ;;  %v117_v62 = vld [vmem:[#allocation8 + $0xf0] sm:$0xff] }
  0x2f   :  { %v211_v37 = vld [vmem:[%s1961_s4] sm:$0xff]  ;;  %1446 = vmatprep.subr.bf16.mxu0 %v1445_v22  ;;  %77 = vst [vmem:[#allocation2 + $0x5] sm:$0x1] %v76_v36  ;;  %v1463_v63 = vpack.c.bf16 %v117_v62, %v115_v61  ;;  %vm208_vm3 = vmand %vm206_vm1, %vm207_vm2  ;;  %v1664_v22 = vmov 1.0   ;;  %s1666_s28 = smov 32   ;;  %s1668_s29 = smov [#allocation9]  }
  0x30   :  { %v80_v39 = vld [vmem:[%s79_s21] sm:$0x1]  ;;  %v1785_v44 = vpack.c.bf16 %v212_v40, %v211_v37  ;;  %v1813_v23 = vsel %vm208_vm3, 2.0, %v1664_v22  ;;  %v1816_v25 = vsel %vm208_vm3, -1.0, %v1661_v7 }
  0x31   :  { %81 = vst [vmem:[#allocation2 + $0x6] sm:$0x1] %v80_v39  ;;  %v84_v43 = vld [vmem:[%s83_s27] sm:$0x1] }
  0x32   :  { %85 = vst [vmem:[#allocation2 + $0x7] sm:$0x1] %v84_v43  ;;  %1448 = vmatpush1.bf16.msra.mxu0 %v1447_v33  ;;  %1467 = vmatpush3.bf16.msra.mxu1 %v1785_v44  ;;  %v112_v51 = vld [vmem:[#allocation8 + $0xc8] sm:$0xff] }
  0x33   :  { %1450 = vmatprep.subr.bf16.mxu0 %v1449_v38  ;;  %1468 = vmatprep.subr.bf16.mxu1 %v1662_v13  ;;  %v1457_v54 = vpack.c.bf16 %v114_v52, %v112_v51  ;;  %v116_v57 = vld [vmem:[#allocation8 + $0xe8] sm:$0xff] }
  0x34   :  { %v1461_v60 = vpack.c.bf16 %v118_v58, %v116_v57  ;;  %v119_v6 = vld [vmem:[%s1960_s3] sm:$0x3]  ;;  %s1665_s3 = smov 64  }
  0x35   :  { %v124_v9 = vrot.slane %v119_v6, %v123_v5  ;;  %v128_v10 = vrot.slane %v119_v6, %v127_v8 }
  0x36   :  { %1452 = vmatpush1.bf16.msra.mxu0 %v1451_v46  ;;  %1470 = vmatpush3.bf16.msra.mxu1 %v1791_v47 }
  0x37   :  { %1454 = vmatprep.subr.bf16.mxu0 %v1453_v48  ;;  %1471 = vmatprep.subr.bf16.mxu1 %v1662_v13 }
  0x39   :  { %1332 = vmatmul.mubr.f32.vlgmr.msra.gmra.mrb[0].mxu1 %v1661_v7  ;;  %v86_v0 = vld [vmem:[#allocation2] sm:$0xff] }
  0x3a   :  { %1456 = vmatpush1.bf16.msra.mxu0 %v1455_v53  ;;  %1473 = vmatpush3.bf16.msra.mxu1 %v1785_v44 }
  0x3b   :  { %1458 = vmatprep.subr.bf16.mxu0 %v1457_v54  ;;  %1474 = vmatprep.subr.bf16.mxu1 %v1662_v13 }
  0x3c   :  { %1342 = vmatprep.mubr.msk.f32.mxu1 %vm1663_vm0, %v1661_v7 }
  0x3e   :  { %1460 = vmatpush1.bf16.msra.mxu0 %v1459_v59  ;;  %1476 = vmatpush3.bf16.msra.mxu1 %v1791_v47 }
  0x3f   :  { %1462 = vmatprep.subr.bf16.mxu0 %v1461_v60  ;;  %1477 = vmatprep.subr.bf16.mxu1 %v1662_v13 }
  0x42   :  { %1464 = vmatpush1.bf16.msra.mxu0 %v1463_v63 }
  0x43   :  { %1489 = vmatprep.subr.bf16.mxu0 %v1662_v13 }
  0x45   :  { %196 = vmatmul.mubr.f32.vlgmr.msra.gmra.mrb[0].mxu0 %v86_v0 }
  0x46   :  { %1491 = vmatpush3.bf16.msra.mxu0 %v1785_v44  ;;  %1375 = vmatprep.mubr.msk.f32.mxu0 %vm1663_vm0, %v1661_v7 }
  0x47   :  { %1492 = vmatprep.subr.bf16.mxu0 %v1662_v13 }
  0x4a   :  { %1494 = vmatpush3.bf16.msra.mxu0 %v1791_v47 }
  0x4b   :  { %1501 = vmatprep.subr.bf16.mxu0 %v1662_v13 }
 0x10c   :  { %v286_v2 = vpop.f32.mrb[0].mxu1 }
 0x10d   :  { %v1333_v4 = vpop.f32.mrb[1].mxu1 }
 0x118   :  { %v197_v11 = vpop.f32.mrb[0].mxu0 }
 0x119   :  { %v198_v12 = vadd.f32 %v197_v11, %v124_v9  ;;  %v199_v14 = vpop.f32.mrb[1].mxu0 }
 0x11a   :  { %v200_v15 = vadd.f32 %v199_v14, %v128_v10 }
 0x11b   :  { %202 = vst [vmem:[#allocation3] sm:$0xff] %v198_v12 }
 0x11c   :  { %203 = vst [vmem:[#allocation3 + $0x8] sm:$0xff] %v200_v15 }
 0x122   :  { %v215_v16 = vld [vmem:[#allocation3] ss:$0 sm:$0xff]  ;;  %v316_v37 = vld [vmem:[#allocation3 + $0x1] ss:$0 sm:$0xff]  ;;  %v418_v58 = vld [vmem:[#allocation3 + $0x2] ss:$0 sm:$0xff] }
 0x123   :  { %v290_v17 = vadd.f32 %v286_v2, %v215_v16  ;;  %v520_v15 = vld [vmem:[#allocation3 + $0x3] ss:$0 sm:$0xff] }
 0x125   :  { %v1255_v18 = vmul.f32 -1.442695, %v290_v17 }
 0x127   :  { %1537 = vpow2.f32 %v1255_v18 }
 0x131   :  { %v1538_v19 = vpop.eup %1537 }
 0x132   :  { %v294_v21 = vadd.f32 1.0, %v1538_v19 }
 0x134   :  { %1539 = vrcp.f32 %v294_v21 }
 0x13e   :  { %v1540_v24 = vpop.eup %1539 }
 0x13f   :  { %v297_v26 = vmul.f32 %v1540_v24, %v1813_v23 }
 0x141   :  { %v298_v27 = vadd.f32 %v297_v26, %v1816_v25 }
 0x143   :  { %301 = vrot.lane.b32.xlu0 %v298_v27, %s1665_s3  ;;  %v299_v30 = vmul.f32 0.0, %v298_v27 }
 0x1b5   :  { %v302_v28 = vpop.permute.xlu0 %301 }
 0x1b6   :  { %v304_v29 = vmul.f32 %v302_v28, %v298_v27 }
 0x1b8   :  { %306 = vrot.lane.b32.xlu0 %v304_v29, %s1666_s28 }
 0x22a   :  { %v307_v31 = vpop.permute.xlu0 %306 }
 0x22b   :  { %v309_v32 = vadd.f32 %v307_v31, %v299_v30 }
 0x22d   :  { %1541 = vtanh.f32 %v309_v32 }
 0x237   :  { %v1542_v33 = vpop.eup %1541 }
 0x238   :  { %312 = vrot.lane.b32.xlu1 %v1542_v33, %s1665_s3 }
 0x2aa   :  { %v313_v34 = vpop.permute.xlu1 %312 }
 0x2ab   :  { %v315_v35 = vmul.f32 %v313_v34, %v298_v27 }
 0x2ad   :  { %318 = vrot.lane.b32.xlu1 %v315_v35, %s1666_s28 }
 0x31f   :  { %v319_v36 = vpop.permute.xlu1 %318 }
 0x320   :  { %1343 = vmatmul.mubr.msk.f32.vlgmr.msra.gmra.mrb[2].mxu1 %vm216_vm4, %v319_v36  ;;  %v622_v36 = vld [vmem:[#allocation3 + $0x4] ss:$0 sm:$0xff] }
 0x321   :  { %1479 = vmatpush3.bf16.msra.mxu1 %v1785_v44  ;;  %1353 = vmatprep.mubr.msk.f32.mxu1 %vm1663_vm0, %v1661_v7 }
 0x322   :  { %1480 = vmatprep.subr.bf16.mxu1 %v1662_v13 }
 0x325   :  { %1482 = vmatpush3.bf16.msra.mxu1 %v1791_v47 }
 0x326   :  { %1483 = vmatprep.subr.bf16.mxu1 %v1662_v13 }
 0x3f3   :  { %v388_v38 = vpop.f32.mrb[2].mxu1 }
 0x3f4   :  { %v392_v39 = vadd.f32 %v388_v38, %v316_v37  ;;  %v1344_v40 = vpop.f32.mrb[3].mxu1 }
 0x3f6   :  { %v1257_v41 = vmul.f32 -1.442695, %v392_v39 }
 0x3f8   :  { %1543 = vpow2.f32 %v1257_v41 }
 0x402   :  { %v1544_v42 = vpop.eup %1543 }
 0x403   :  { %v396_v43 = vadd.f32 1.0, %v1544_v42 }
 0x405   :  { %1545 = vrcp.f32 %v396_v43 }
 0x40f   :  { %v1546_v45 = vpop.eup %1545 }
 0x410   :  { %v399_v46 = vmul.f32 %v1546_v45, %v1813_v23 }
 0x412   :  { %v400_v48 = vadd.f32 %v399_v46, %v1816_v25 }
 0x414   :  { %403 = vrot.lane.b32.xlu0 %v400_v48, %s1665_s3  ;;  %v401_v51 = vmul.f32 %v400_v48, %v309_v32 }
 0x486   :  { %v404_v49 = vpop.permute.xlu0 %403 }
 0x487   :  { %v406_v50 = vmul.f32 %v404_v49, %v400_v48 }
 0x489   :  { %408 = vrot.lane.b32.xlu1 %v406_v50, %s1666_s28 }
 0x4fb   :  { %v409_v52 = vpop.permute.xlu1 %408 }
 0x4fc   :  { %v411_v53 = vadd.f32 %v409_v52, %v401_v51 }
 0x4fe   :  { %1547 = vtanh.f32 %v411_v53 }
 0x508   :  { %v1548_v54 = vpop.eup %1547 }
 0x509   :  { %414 = vrot.lane.b32.xlu0 %v1548_v54, %s1665_s3 }
 0x57b   :  { %v415_v55 = vpop.permute.xlu0 %414 }
 0x57c   :  { %v417_v56 = vmul.f32 %v415_v55, %v400_v48 }
 0x57e   :  { %420 = vrot.lane.b32.xlu1 %v417_v56, %s1666_s28 }
 0x5f0   :  { %v421_v57 = vpop.permute.xlu1 %420 }
 0x5f1   :  { %1354 = vmatmul.mubr.msk.f32.vlgmr.msra.gmra.mrb[4].mxu1 %vm216_vm4, %v421_v57  ;;  %v724_v57 = vld [vmem:[#allocation3 + $0x5] ss:$0 sm:$0xff] }
 0x5f2   :  { %1485 = vmatpush3.bf16.msra.mxu1 %v1785_v44  ;;  %1364 = vmatprep.mubr.msk.f32.mxu1 %vm1663_vm0, %v1661_v7 }
 0x5f3   :  { %1486 = vmatprep.subr.bf16.mxu1 %v1662_v13 }
 0x5f6   :  { %1488 = vmatpush3.bf16.msra.mxu1 %v1791_v47 }
 0x5f7   :  { %1495 = vmatprep.subr.bf16.mxu1 %v1662_v13 }
 0x6c4   :  { %v490_v59 = vpop.f32.mrb[4].mxu1 }
 0x6c5   :  { %v494_v60 = vadd.f32 %v490_v59, %v418_v58  ;;  %v1355_v61 = vpop.f32.mrb[5].mxu1 }
 0x6c7   :  { %v1259_v62 = vmul.f32 -1.442695, %v494_v60 }
 0x6c9   :  { %1549 = vpow2.f32 %v1259_v62 }
 0x6d3   :  { %v1550_v63 = vpop.eup %1549 }
 0x6d4   :  { %v498_v0 = vadd.f32 1.0, %v1550_v63 }
 0x6d6   :  { %1551 = vrcp.f32 %v498_v0 }
 0x6e0   :  { %v1552_v1 = vpop.eup %1551 }
 0x6e1   :  { %v501_v2 = vmul.f32 %v1552_v1, %v1813_v23 }
 0x6e3   :  { %v502_v3 = vadd.f32 %v501_v2, %v1816_v25 }
 0x6e5   :  { %505 = vrot.lane.b32.xlu0 %v502_v3, %s1665_s3  ;;  %v503_v6 = vmul.f32 %v502_v3, %v411_v53 }
 0x757   :  { %v506_v4 = vpop.permute.xlu0 %505 }
 0x758   :  { %v508_v5 = vmul.f32 %v506_v4, %v502_v3 }
 0x75a   :  { %510 = vrot.lane.b32.xlu1 %v508_v5, %s1666_s28 }
 0x7cc   :  { %v511_v8 = vpop.permute.xlu1 %510 }
 0x7cd   :  { %v513_v9 = vadd.f32 %v511_v8, %v503_v6 }
 0x7cf   :  { %1553 = vtanh.f32 %v513_v9 }
 0x7d9   :  { %v1554_v10 = vpop.eup %1553 }
 0x7da   :  { %516 = vrot.lane.b32.xlu0 %v1554_v10, %s1665_s3 }
 0x84c   :  { %v517_v11 = vpop.permute.xlu0 %516 }
 0x84d   :  { %v519_v12 = vmul.f32 %v517_v11, %v502_v3  ;;  %v826_v11 = vld [vmem:[#allocation3 + $0x6] ss:$0 sm:$0xff] }
 0x84f   :  { %522 = vrot.lane.b32.xlu1 %v519_v12, %s1666_s28 }
 0x8c1   :  { %v523_v14 = vpop.permute.xlu1 %522 }
 0x8c2   :  { %1365 = vmatmul.mubr.msk.f32.vlgmr.msra.gmra.mrb[6].mxu1 %vm216_vm4, %v523_v14 }
 0x8c3   :  { %1497 = vmatpush3.bf16.msra.mxu1 %v1785_v44  ;;  %1386 = vmatprep.mubr.msk.f32.mxu1 %vm1663_vm0, %v1661_v7 }
 0x8c4   :  { %1498 = vmatprep.subr.bf16.mxu1 %v1662_v13 }
 0x8c7   :  { %1500 = vmatpush3.bf16.msra.mxu1 %v1791_v47 }
 0x8c8   :  { %1507 = vmatprep.subr.bf16.mxu1 %v1662_v13 }
 0x995   :  { %v592_v16 = vpop.f32.mrb[6].mxu1 }
 0x996   :  { %v596_v17 = vadd.f32 %v592_v16, %v520_v15  ;;  %v1366_v18 = vpop.f32.mrb[7].mxu1 }
 0x998   :  { %v1261_v19 = vmul.f32 -1.442695, %v596_v17 }
 0x99a   :  { %1555 = vpow2.f32 %v1261_v19 }
 0x9a4   :  { %v1556_v20 = vpop.eup %1555 }
 0x9a5   :  { %v600_v21 = vadd.f32 1.0, %v1556_v20 }
 0x9a7   :  { %1557 = vrcp.f32 %v600_v21 }
 0x9b1   :  { %v1558_v22 = vpop.eup %1557 }
 0x9b2   :  { %v603_v24 = vmul.f32 %v1558_v22, %v1813_v23 }
 0x9b4   :  { %v604_v26 = vadd.f32 %v603_v24, %v1816_v25 }
 0x9b6   :  { %607 = vrot.lane.b32.xlu0 %v604_v26, %s1665_s3  ;;  %v605_v29 = vmul.f32 %v604_v26, %v513_v9 }
 0xa28   :  { %v608_v27 = vpop.permute.xlu0 %607 }
 0xa29   :  { %v610_v28 = vmul.f32 %v608_v27, %v604_v26 }
 0xa2b   :  { %612 = vrot.lane.b32.xlu1 %v610_v28, %s1666_s28 }
 0xa9d   :  { %v613_v30 = vpop.permute.xlu1 %612 }
 0xa9e   :  { %v615_v31 = vadd.f32 %v613_v30, %v605_v29 }
 0xaa0   :  { %1559 = vtanh.f32 %v615_v31 }
 0xaaa   :  { %v1560_v32 = vpop.eup %1559 }
 0xaab   :  { %618 = vrot.lane.b32.xlu0 %v1560_v32, %s1665_s3 }
 0xb1d   :  { %v619_v33 = vpop.permute.xlu0 %618 }
 0xb1e   :  { %v621_v34 = vmul.f32 %v619_v33, %v604_v26  ;;  %v1030_v33 = vld [vmem:[#allocation3 + $0xf] ss:$0 sm:$0xff] }
 0xb20   :  { %624 = vrot.lane.b32.xlu1 %v621_v34, %s1666_s28  ;;  %v1270_v34 = vmul.f32 -1.442695, %v1030_v33 }
 0xb92   :  { %v625_v35 = vpop.permute.xlu1 %624 }
 0xb93   :  { %1376 = vmatmul.mubr.msk.f32.vlgmr.msra.gmra.mrb[2].mxu0 %vm216_vm4, %v625_v35  ;;  %v928_v35 = vld [vmem:[#allocation3 + $0x7] ss:$0 sm:$0xff] }
 0xb94   :  { %1503 = vmatpush3.bf16.msra.mxu0 %v1785_v44  ;;  %1397 = vmatprep.mubr.msk.f32.mxu0 %vm1663_vm0, %v1661_v7 }
 0xb95   :  { %1504 = vmatprep.subr.bf16.mxu0 %v1662_v13 }
 0xb98   :  { %1506 = vmatpush3.bf16.msra.mxu0 %v1791_v47 }
 0xb99   :  { %1513 = vmatprep.subr.bf16.mxu0 %v1662_v13 }
 0xc66   :  { %v694_v37 = vpop.f32.mrb[2].mxu0 }
 0xc67   :  { %v698_v38 = vadd.f32 %v694_v37, %v622_v36  ;;  %v1377_v39 = vpop.f32.mrb[3].mxu0 }
 0xc69   :  { %v1263_v40 = vmul.f32 -1.442695, %v698_v38 }
 0xc6b   :  { %1561 = vpow2.f32 %v1263_v40 }
 0xc75   :  { %v1562_v41 = vpop.eup %1561 }
 0xc76   :  { %v702_v42 = vadd.f32 1.0, %v1562_v41 }
 0xc78   :  { %1563 = vrcp.f32 %v702_v42 }
 0xc82   :  { %v1564_v43 = vpop.eup %1563 }
 0xc83   :  { %v705_v45 = vmul.f32 %v1564_v43, %v1813_v23 }
 0xc85   :  { %v706_v46 = vadd.f32 %v705_v45, %v1816_v25 }
 0xc87   :  { %709 = vrot.lane.b32.xlu0 %v706_v46, %s1665_s3  ;;  %v707_v50 = vmul.f32 %v706_v46, %v615_v31 }
 0xcf9   :  { %v710_v48 = vpop.permute.xlu0 %709 }
 0xcfa   :  { %v712_v49 = vmul.f32 %v710_v48, %v706_v46 }
 0xcfc   :  { %714 = vrot.lane.b32.xlu1 %v712_v49, %s1666_s28 }
 0xd6e   :  { %v715_v51 = vpop.permute.xlu1 %714 }
 0xd6f   :  { %v717_v52 = vadd.f32 %v715_v51, %v707_v50 }
 0xd71   :  { %1565 = vtanh.f32 %v717_v52 }
 0xd7b   :  { %v1566_v53 = vpop.eup %1565 }
 0xd7c   :  { %720 = vrot.lane.b32.xlu0 %v1566_v53, %s1665_s3 }
 0xdee   :  { %v721_v54 = vpop.permute.xlu0 %720 }
 0xdef   :  { %v723_v55 = vmul.f32 %v721_v54, %v706_v46 }
 0xdf1   :  { %726 = vrot.lane.b32.xlu1 %v723_v55, %s1666_s28  ;;  %v1054_v55 = vld [vmem:[%s1962_s5 + $0x20] sm:$0xff] }
 0xe63   :  { %v727_v56 = vpop.permute.xlu1 %726 }
 0xe64   :  { %1387 = vmatmul.mubr.msk.f32.vlgmr.msra.gmra.mrb[8].mxu1 %vm216_vm4, %v727_v56 }
 0xe65   :  { %1509 = vmatpush3.bf16.msra.mxu1 %v1785_v44  ;;  %1408 = vmatprep.mubr.msk.f32.mxu1 %vm1663_vm0, %v1661_v7 }
 0xe66   :  { %1510 = vmatprep.subr.bf16.mxu1 %v1662_v13 }
 0xe69   :  { %1512 = vmatpush3.bf16.msra.mxu1 %v1791_v47 }
 0xe6a   :  { %1519 = vmatprep.subr.bf16.mxu1 %v1662_v13 }
 0xf37   :  { %v796_v58 = vpop.f32.mrb[8].mxu1 }
 0xf38   :  { %v800_v59 = vadd.f32 %v796_v58, %v724_v57  ;;  %v1388_v60 = vpop.f32.mrb[9].mxu1 }
 0xf39   :  { %v1056_v60 = vld [vmem:[%s1962_s5 + $0x30] sm:$0xff] }
 0xf3a   :  { %v1265_v61 = vmul.f32 -1.442695, %v800_v59 }
 0xf3c   :  { %1567 = vpow2.f32 %v1265_v61  ;;  %v1057_v61 = vld [vmem:[%s1962_s5 + $0x38] sm:$0xff] }
 0xf46   :  { %v1568_v62 = vpop.eup %1567 }
 0xf47   :  { %v804_v63 = vadd.f32 1.0, %v1568_v62  ;;  %v1517_v62 = vpack.c.bf16 %v1057_v61, %v1056_v60 }
 0xf49   :  { %1569 = vrcp.f32 %v804_v63  ;;  %v1050_v63 = vld [vmem:[%s1962_s5] sm:$0xff] }
 0xf53   :  { %v1570_v0 = vpop.eup %1569 }
 0xf54   :  { %v807_v44 = vmul.f32 %v1570_v0, %v1813_v23  ;;  %v1051_v0 = vld [vmem:[%s1962_s5 + $0x8] sm:$0xff] }
 0xf56   :  { %v808_v1 = vadd.f32 %v807_v44, %v1816_v25  ;;  %v1052_v44 = vld [vmem:[%s1962_s5 + $0x10] sm:$0xff] }
 0xf58   :  { %811 = vrot.lane.b32.xlu0 %v808_v1, %s1665_s3  ;;  %v809_v3 = vmul.f32 %v808_v1, %v717_v52 }
 0xfca   :  { %v812_v2 = vpop.permute.xlu0 %811 }
 0xfcb   :  { %v814_v47 = vmul.f32 %v812_v2, %v808_v1  ;;  %v1053_v2 = vld [vmem:[%s1962_s5 + $0x18] sm:$0xff] }
 0xfcd   :  { %816 = vrot.lane.b32.xlu1 %v814_v47, %s1666_s28  ;;  %v1523_v47 = vpack.c.bf16 %v1053_v2, %v1052_v44 }
0x103f   :  { %v817_v4 = vpop.permute.xlu1 %816 }
0x1040   :  { %v819_v5 = vadd.f32 %v817_v4, %v809_v3 }
0x1042   :  { %1571 = vtanh.f32 %v819_v5 }
0x104c   :  { %v1572_v6 = vpop.eup %1571 }
0x104d   :  { %822 = vrot.lane.b32.xlu0 %v1572_v6, %s1665_s3 }
0x10bf   :  { %v823_v8 = vpop.permute.xlu0 %822 }
0x10c0   :  { %v825_v9 = vmul.f32 %v823_v8, %v808_v1  ;;  %v1520_v1 = vpack.c.bf16 %v1051_v0, %v1050_v63 }
0x10c2   :  { %828 = vrot.lane.b32.xlu1 %v825_v9, %s1666_s28 }
0x1134   :  { %v829_v10 = vpop.permute.xlu1 %828 }
0x1135   :  { %1398 = vmatmul.mubr.msk.f32.vlgmr.msra.gmra.mrb[4].mxu0 %vm216_vm4, %v829_v10 }
0x1136   :  { %1419 = vmatprep.mubr.msk.f32.mxu0 %vm1663_vm0, %v1661_v7 }
0x1208   :  { %v898_v12 = vpop.f32.mrb[4].mxu0 }
0x1209   :  { %v902_v14 = vadd.f32 %v898_v12, %v826_v11  ;;  %v1399_v15 = vpop.f32.mrb[5].mxu0 }
0x120b   :  { %v1267_v16 = vmul.f32 -1.442695, %v902_v14  ;;  %v1208_v14 = vld [vmem:[%s1963_s6] sm:$0x1]  ;;  %s1230_s6 = sshll.u32 %s1668_s29, 4  ;;  %s1231_s6 = int_to_ptr.vmem [resolvable:$true] %s1230_s6 }
0x120c   :  { %s1629_s30 = scalar_lea.vmem %s1231_s6, 16  ;;  %s1633_s8 = scalar_lea.vmem %s1231_s6, 32 }
0x120d   :  { %1573 = vpow2.f32 %v1267_v16  ;;  %p1630_p13 = scmp.ne.s32.totalorder %s1231_s6, %s1629_s30  ;;  %p1634_p0 = scmp.lt.s32.totalorder %s1231_s6, %s1231_s6 }
0x120e   :  { %p1635_p1 = scmp.lt.s32.totalorder %s1633_s8, %s1629_s30 }
0x1210   :  { %p1636_p2 = por %p1635_p1, %p1634_p0 }
0x1212   :  { %p1637_p3 = pnand %p1636_p2, %p1630_p13 }
0x1217   :  { %v1574_v17 = vpop.eup %1573 }
0x1218   :  { %v906_v18 = vadd.f32 1.0, %v1574_v17 }
0x121a   :  { %1575 = vrcp.f32 %v906_v18 }
0x1224   :  { %v1576_v19 = vpop.eup %1575 }
0x1225   :  { %v909_v20 = vmul.f32 %v1576_v19, %v1813_v23 }
0x1227   :  { %v910_v21 = vadd.f32 %v909_v20, %v1816_v25 }
0x1229   :  { %913 = vrot.lane.b32.xlu0 %v910_v21, %s1665_s3  ;;  %v911_v26 = vmul.f32 %v910_v21, %v819_v5 }
0x129b   :  { %v914_v22 = vpop.permute.xlu0 %913 }
0x129c   :  { %v916_v24 = vmul.f32 %v914_v22, %v910_v21 }
0x129e   :  { %918 = vrot.lane.b32.xlu1 %v916_v24, %s1666_s28 }
0x1310   :  { %v919_v27 = vpop.permute.xlu1 %918 }
0x1311   :  { %v921_v28 = vadd.f32 %v919_v27, %v911_v26 }
0x1313   :  { %1577 = vtanh.f32 %v921_v28 }
0x1314   :  { %1579 = vpow2.f32 %v1270_v34 }
0x131d   :  { %v1578_v29 = vpop.eup %1577 }
0x131e   :  { %924 = vrot.lane.b32.xlu0 %v1578_v29, %s1665_s3  ;;  %v1580_v40 = vpop.eup %1579 }
0x131f   :  { %v1034_v41 = vadd.f32 1.0, %v1580_v40 }
0x1390   :  { %v925_v30 = vpop.permute.xlu0 %924 }
0x1391   :  { %v927_v31 = vmul.f32 %v925_v30, %v910_v21 }
0x1393   :  { %930 = vrot.lane.b32.xlu1 %v927_v31, %s1666_s28 }
0x1405   :  { %v931_v32 = vpop.permute.xlu1 %930 }
0x1406   :  { %1409 = vmatmul.mubr.msk.f32.vlgmr.msra.gmra.mrb[10].mxu1 %vm216_vm4, %v931_v32 }
0x1407   :  { %1430 = vmatprep.mubr.msk.f32.mxu1 %vm1663_vm0, %v1661_v7  ;;  %1521 = vmatpush3.bf16.msra.mxu1 %v1520_v1 }
0x1408   :  { %1522 = vmatprep.subr.bf16.mxu1 %v1662_v13 }
0x140b   :  { %1524 = vmatpush3.bf16.msra.mxu1 %v1523_v47 }
0x14d9   :  { %v1000_v36 = vpop.f32.mrb[10].mxu1 }
0x14da   :  { %v1004_v37 = vadd.f32 %v1000_v36, %v928_v35  ;;  %v1410_v38 = vpop.f32.mrb[11].mxu1 }
0x14dc   :  { %v1269_v39 = vmul.f32 -1.442695, %v1004_v37 }
0x14de   :  { %1581 = vpow2.f32 %v1269_v39 }
0x14df   :  { %1583 = vrcp.f32 %v1034_v41 }
0x14e8   :  { %v1582_v42 = vpop.eup %1581 }
0x14e9   :  { %v1008_v43 = vadd.f32 1.0, %v1582_v42  ;;  %v1584_v45 = vpop.eup %1583 }
0x14ea   :  { %v1037_v49 = vmul.f32 %v1584_v45, %v1813_v23 }
0x14eb   :  { %1585 = vrcp.f32 %v1008_v43 }
0x14ec   :  { %v1038_v50 = vadd.f32 %v1037_v49, %v1816_v25 }
0x14f5   :  { %v1586_v46 = vpop.eup %1585 }
0x14f6   :  { %v1011_v48 = vmul.f32 %v1586_v46, %v1813_v23  ;;  %v1055_v23 = vld [vmem:[%s1962_s5 + $0x28] sm:$0xff] }
0x14f7   :  { %v1514_v56 = vpack.c.bf16 %v1055_v23, %v1054_v55 }
0x14f8   :  { %v1012_v7 = vadd.f32 %v1011_v48, %v1816_v25 }
0x14f9   :  { %1515 = vmatpush3.bf16.msra.mxu0 %v1514_v56 }
0x14fa   :  { %1015 = vrot.lane.b32.xlu0 %v1012_v7, %s1665_s3  ;;  %1516 = vmatprep.subr.bf16.mxu0 %v1662_v13  ;;  %v1013_v57 = vmul.f32 %v1012_v7, %v921_v28 }
0x14fd   :  { %1518 = vmatpush3.bf16.msra.mxu0 %v1517_v62 }
0x14fe   :  { %1040 = vrot.lane.b32.xlu0 %v1038_v50, %s1665_s3 }
0x156c   :  { %v1016_v51 = vpop.permute.xlu0 %1015 }
0x156d   :  { %v1018_v52 = vmul.f32 %v1016_v51, %v1012_v7 }
0x156f   :  { %1020 = vrot.lane.b32.xlu1 %v1018_v52, %s1666_s28 }
0x1570   :  { %v1041_v53 = vpop.permute.xlu0 %1040 }
0x1571   :  { %v1043_v54 = vmul.f32 %v1041_v53, %v1038_v50 }
0x1573   :  { %1587 = vtanh.f32 %v1043_v54 }
0x157d   :  { %v1588_v25 = vpop.eup %1587 }
0x157e   :  { %1046 = vrot.lane.b32.xlu0 %v1588_v25, %s1667_s14 }
0x15e1   :  { %v1021_v58 = vpop.permute.xlu1 %1020 }
0x15e2   :  { %v1023_v59 = vadd.f32 %v1021_v58, %v1013_v57 }
0x15e4   :  { %1589 = vtanh.f32 %v1023_v59 }
0x15ee   :  { %v1590_v3 = vpop.eup %1589 }
0x15ef   :  { %1026 = vrot.lane.b32.xlu1 %v1590_v3, %s1665_s3 }
0x15f0   :  { %v1047_v4 = vpop.permute.xlu0 %1046 }
0x15f1   :  { %v1049_v5 = vmul.f32 %v1047_v4, %v1038_v50 }
0x15f3   :  { %1059 = vrot.lane.b32.xlu1 %v1049_v5, %s1666_s28 }
0x1661   :  { %v1027_v6 = vpop.permute.xlu1 %1026 }
0x1662   :  { %v1029_v8 = vmul.f32 %v1027_v6, %v1012_v7 }
0x1664   :  { %1134 = vrot.lane.b32.xlu0 %v1029_v8, %s1666_s28 }
0x1665   :  { %v1060_v9 = vpop.permute.xlu1 %1059 }
0x1666   :  { %1420 = vmatmul.mubr.msk.f32.vlgmr.msra.gmra.mrb[6].mxu0 %vm216_vm4, %v1060_v9 }
0x16d6   :  { %v1135_v10 = vpop.permute.xlu0 %1134 }
0x16d7   :  { %1431 = vmatmul.mubr.msk.f32.vlgmr.msra.gmra.mrb[12].mxu1 %vm216_vm4, %v1135_v10 }
0x1739   :  { %v1129_v11 = vpop.f32.mrb[6].mxu0 }
0x173a   :  { %v1421_v13 = vpop.f32.mrb[7].mxu0 }
0x17aa   :  { %v1204_v12 = vpop.f32.mrb[12].mxu1 }
0x17ab   :  { %v1205_v15 = vadd.f32 %v1204_v12, %v1129_v11  ;;  %v1432_v16 = vpop.f32.mrb[13].mxu1 }
0x17ad   :  { %v1209_v17 = vadd.f32 %v1208_v14, %v1205_v15 }
0x17af   :  { %v1211_v18 = vsel %vm1210_vm5, %v1209_v17, -inf }
0x17b0   :  { %1212 = vmax.xlane.f32.xlu1 %v1211_v18 }
0x183d   :  { %v1213_v19 = vpop.xlane.xlu1 %1212 }
0x183e   :  { %v1214_v20 = vsub.f32 %v1209_v17, %v1213_v19 }
0x1840   :  { %v1215_v21 = vmul.f32 1.442695, %v1214_v20 }
0x1842   :  { %1591 = vpow2.f32 %v1215_v21 }
0x184c   :  { %v1592_v22 = vpop.eup %1591 }
0x184d   :  { %v1217_v24 = vsel %vm1210_vm5, %v1592_v22, 0.0 }
0x184e   :  { %1218 = vadd.xlane.f32.xlu0 %v1217_v24 }
0x18db   :  { %v1219_v26 = vpop.xlane.xlu0 %1218 }
0x18dc   :  { %1593 = vlog2.f32 %v1219_v26 }
0x18e6   :  { %v1594_v27 = vpop.eup %1593 }
0x18e7   :  { %v1221_v28 = vmul.f32 0.6931472, %v1594_v27 }
0x18e9   :  { %v1222_v29 = vsub.f32 %v1214_v20, %v1221_v28 }
0x18eb   :  { %1223 = vst.msk [vmem:[#allocation9] sm:$0x1] %vm1210_vm5, %v1222_v29 }
0x18ec   :  { %1640 = shalt.err (!%p1637_p3)
}
0x18ed   :  { %s1641_s10 = scalar_lea.hbm %s1964_s7, 16 }
0x18ee   :  { %p1642_p4 = scmp.ne.s32.totalorder %s1964_s7, %s1641_s10  ;;  %p1645_p5 = scmp.lt.u32.totalorder %s1641_s10, %s1964_s7 }
0x18f0   :  { %p1647_p6 = pnand %p1645_p5, %p1642_p4 }
0x18f2   :  { %1650 = shalt.err (!%p1647_p6)
}
0x18f3   :  { %1233 = dma.vmem_to_hbm [thread:$0]  %s1231_s6, 16, %s1964_s7, [#allocation6]  }
0x18f4   :  { %1655 = dma.done.wait [#allocation6], 16  }
0x18f5   :  { %1656 = vsyncadd [#allocation6], 4294967280 }
0x18f6   :  { %1237 = vsyncpa [#allocation5], 1 }
0x18f7   :  { %1238 = vsyncpa [#allocation6], 1 }
0x18f8   :  { %1239 = vsyncpa [#allocation7], 1 }

</bundles_post_ra>
